<compile_context>
chip_gen: v5e
topology: v5e:2x2
jax: 0.10.0
libtpu: 0.0.40
codegen_flags: <defaults>
</compile_context>

<pallas_src>
import jax
import jax.numpy as jnp
from jax import lax
from jax.experimental import pallas as pl
from jax.experimental.pallas import tpu as pltpu


def _round_up(x, m):
    return ((x + m - 1) // m) * m


def _tpu_vmem_bytes():
    try:
        return int(pltpu.get_tpu_info().vmem_capacity_bytes)
    except Exception:
        return 128 * 1024 * 1024


def _default_tiles(vmem_bytes):
    # v7x-class (64 MiB VMEM/TC, ~3.2 TB/s HBM): 1024x1024 output tiles reach
    # the lower flop/byte balance and keep VMEM modest.
    # v5e/v6e-class (128 MiB VMEM): 2048x1024 reaches the v6e balance point.
    if vmem_bytes <= 64 * 1024 * 1024:
        return 1024, 1024, 512
    return 2048, 1024, 512


def _pick_k_tiling(K, bk_max):
    """Return (bk, Kp).  K is zero-padded to Kp only when K > bk_max."""
    if K <= bk_max:
        return K, K                       # single full-K block, no padding
    Kp = _round_up(K, 128)
    bk = min(_round_up(bk_max, 128), Kp)
    while Kp % bk != 0:                   # bk=128 always divides Kp
        bk -= 128
    return bk, Kp


def _linear_kernel_out_acc(x_ref, w_ref, b_ref, o_ref):
    """float32 output: accumulate directly into the (k-invariant) output block."""
    @pl.when(pl.program_id(2) == 0)
    def _init():
        o_ref[...] = jnp.broadcast_to(b_ref[...].astype(jnp.float32), o_ref.shape)

    # x (bm, bk) @ w (bn, bk)^T  — weight stays in PyTorch (N, K) layout.
    o_ref[...] += lax.dot_general(
        x_ref[...], w_ref[...],
        dimension_numbers=(((1,), (1,)), ((), ())),
        preferred_element_type=jnp.float32,
    )


def _linear_kernel_scratch_acc(x_ref, w_ref, b_ref, o_ref, acc_ref):
    """non-f32 output: f32 VMEM accumulator with init/finalize."""
    k = pl.program_id(2)

    @pl.when(k == 0)
    def _init():
        acc_ref[...] = jnp.broadcast_to(b_ref[...].astype(jnp.float32), acc_ref.shape)

    acc_ref[...] += lax.dot_general(
        x_ref[...], w_ref[...],
        dimension_numbers=(((1,), (1,)), ((), ())),
        preferred_element_type=jnp.float32,
    )

    @pl.when(k == pl.num_programs(2) - 1)
    def _finalize():
        o_ref[...] = acc_ref[...].astype(o_ref.dtype)


def linear_layer_forward(x, weight, bias=None, *, squeeze_it=False,
                         bm=None, bn=None, bk=None):
    """x: (..., in_features); weight: (out_features, in_features) [PyTorch layout];
    bias: (out_features,) or None."""
    if squeeze_it:
        x = x.reshape(x.shape[0], -1)     # torch.flatten(x, start_dim=1)

    lead = x.shape[:-1]
    K = x.shape[-1]
    N, Kw = weight.shape
    assert Kw == K, (weight.shape, K)

    x2d = x.reshape(-1, K)
    M = x2d.shape[0]

    vmem_cap = _tpu_vmem_bytes()
    dbm, dbn, dbk = _default_tiles(vmem_cap)
    bm = dbm if bm is None else bm
    bn = dbn if bn is None else bn
    bk = dbk if bk is None else bk

    # Clamp tiles to the (aligned) problem size; pl.cdiv edge blocks handle the
    # M/N tails natively, so no padding copies are needed for them.
    bm = min(bm, _round_up(M, 8))
    bn = min(bn, _round_up(N, 128))       # lane-aligned output block
    bk, Kp = _pick_k_tiling(K, bk)

    # Only the reduction (K) axis needs an explicit zero pad.
    if Kp != K:
        x2d = jnp.pad(x2d, ((0, 0), (0, Kp - K)))
        weight = jnp.pad(weight, ((0, 0), (0, Kp - K)))

    if bias is None:
        bias2d = jnp.zeros((1, N), dtype=x.dtype)
    else:
        bias2d = bias.reshape(1, N)

    out_dtype = x.dtype
    use_scratch = jnp.dtype(out_dtype) != jnp.dtype(jnp.float32)

    grid = (pl.cdiv(M, bm), pl.cdiv(N, bn), Kp // bk)

    in_item = jnp.dtype(x.dtype).itemsize
    out_item = jnp.dtype(out_dtype).itemsize

    # Actual HBM traffic including re-fetch of x across N tiles and of the
    # weight across M tiles (advisory scheduling hint for XLA).
    cost = pl.CostEstimate(
        flops=2 * M * N * K,
        transcendentals=0,
        bytes_accessed=int(in_item * (M * Kp * grid[1] + Kp * N * grid[0] + N)
                           + out_item * M * N),
    )

    # Derive the VMEM request from the chosen tiles instead of hard-coding the
    # physical capacity (leave headroom on 64 MiB parts).
    need = (2 * (bm * bk + bk * bn) * in_item     # double-buffered inputs
            + 2 * bm * bn * out_item              # double-buffered output
            + 2 * bn * in_item)                   # bias
    if use_scratch:
        need += bm * bn * 4                       # f32 accumulator scratch
    vmem_limit = max(int(need * 1.3), 16 * 1024 * 1024)
    vmem_limit = min(vmem_limit, int(vmem_cap * 0.9))

    kernel = _linear_kernel_scratch_acc if use_scratch else _linear_kernel_out_acc
    scratch = [pltpu.VMEM((bm, bn), jnp.float32)] if use_scratch else []

    out = pl.pallas_call(
        kernel,
        out_shape=jax.ShapeDtypeStruct((M, N), out_dtype),
        grid_spec=pltpu.PrefetchScalarGridSpec(
            num_scalar_prefetch=0,
            grid=grid,
            in_specs=[
                pl.BlockSpec((bm, bk), lambda i, j, k: (i, k)),   # activations (M, Kp)
                pl.BlockSpec((bn, bk), lambda i, j, k: (j, k)),   # weight (N, Kp)
                pl.BlockSpec((1, bn), lambda i, j, k: (0, j)),    # bias (1, N)
            ],
            out_specs=pl.BlockSpec((bm, bn), lambda i, j, k: (i, j)),
            scratch_shapes=scratch,
        ),
        compiler_params=pltpu.CompilerParams(
            dimension_semantics=("parallel", "parallel", "arbitrary"),
            vmem_limit_bytes=vmem_limit,
        ),
        cost_estimate=cost,
    )(x2d, weight, bias2d)

    return out.reshape(lead + (N,))


if __name__ == "__main__":
    key = jax.random.PRNGKey(0)
    kx, kw, kb = jax.random.split(key, 3)

    batch, seq, in_features, out_features = 2, 8, 32, 64
    x = jax.random.normal(kx, (batch, seq, in_features), dtype=jnp.float32)
    w = jax.random.normal(kw, (out_features, in_features), dtype=jnp.float32) * 0.1
    b = jax.random.normal(kb, (out_features,), dtype=jnp.float32) * 0.1

    # f32 path (accumulate-into-output kernel).
    out = jax.block_until_ready(linear_layer_forward(x, w, b, squeeze_it=False))
    ref = jnp.matmul(x, w.T, precision=jax.lax.Precision.HIGHEST) + b.reshape(1, 1, -1)
    assert out.shape == (batch, seq, out_features)
    assert out.dtype == x.dtype
    # MXU f32 matmul uses bf16 passes; tolerance documented accordingly.
    assert jnp.allclose(out, ref, atol=1e-3, rtol=1e-3), float(jnp.max(jnp.abs(out - ref)))

    # squeeze_it path: 4-D input flattened from start_dim=1 -> (2, 32).
    x4 = jax.random.normal(kx, (2, 4, 4, 2), dtype=jnp.float32)
    out2 = jax.block_until_ready(linear_layer_forward(x4, w, b, squeeze_it=True))
    ref2 = (jnp.matmul(x4.reshape(2, -1), w.T, precision=jax.lax.Precision.HIGHEST)
            + b.reshape(1, -1))
    assert out2.shape == (2, out_features)
    assert jnp.allclose(out2, ref2, atol=1e-3, rtol=1e-3)

    # bf16 path (scratch-accumulator kernel).
    xb = x.astype(jnp.bfloat16)
    wb = w.astype(jnp.bfloat16)
    bb = b.astype(jnp.bfloat16)
    out3 = jax.block_until_ready(linear_layer_forward(xb, wb, bb))
    ref3 = (jnp.matmul(xb.astype(jnp.float32), wb.astype(jnp.float32).T)
            + bb.astype(jnp.float32).reshape(1, 1, -1))
    assert out3.dtype == jnp.bfloat16
    assert jnp.allclose(out3.astype(jnp.float32), ref3, atol=3e-2, rtol=3e-2)

    print("KERNEL_OK")
</pallas_src>

<mosaic_0001>
module attributes {stable_mosaic.version = 11 : i64} {
  func.func @_linear_kernel_out_acc(%arg0: i32, %arg1: i32, %arg2: i32, %arg3: memref<16x32xf32, #tpu.memory_space<vmem>>, %arg4: memref<128x32xf32, #tpu.memory_space<vmem>>, %arg5: memref<1x128xf32, #tpu.memory_space<vmem>>, %arg6: memref<16x128xf32, #tpu.memory_space<vmem>>) attributes {dimension_semantics = [#tpu.dimension_semantics<parallel>, #tpu.dimension_semantics<parallel>, #tpu.dimension_semantics<arbitrary>], iteration_bounds = array<i64: 1, 1, 1>, scalar_prefetch = 0 : i64, scratch_operands = 0 : i64, tpu.core_type = #tpu.core_type<tc>, window_params = [{transform_indices = @transform_0, window_bounds = array<i64: 16, 32>}, {transform_indices = @transform_1, window_bounds = array<i64: 128, 32>}, {transform_indices = @transform_2, window_bounds = array<i64: 1, 128>}, {transform_indices = @transform_3, window_bounds = array<i64: 16, 128>}]} {
    %c0_i32 = arith.constant 0 : i32
    %0 = arith.cmpi eq, %arg2, %c0_i32 : i32
    %1 = arith.extui %0 : i1 to i32
    %c0_i32_0 = arith.constant 0 : i32
    %2 = arith.cmpi ne, %1, %c0_i32_0 : i32
    scf.if %2 {
      %c0_8 = arith.constant 0 : index
      %c0_9 = arith.constant 0 : index
      %9 = vector.load %arg5[%c0_8, %c0_9] : memref<1x128xf32, #tpu.memory_space<vmem>>, vector<1x128xf32>
      %10 = vector.shape_cast %9 : vector<1x128xf32> to vector<1x128xf32>
      %11 = vector.broadcast %10 : vector<1x128xf32> to vector<16x128xf32>
      %c0_10 = arith.constant 0 : index
      %c0_11 = arith.constant 0 : index
      %12 = vector.load %arg6[%c0_10, %c0_11] : memref<16x128xf32, #tpu.memory_space<vmem>>, vector<16x128xf32>
      tpu.vector_store %arg6[%c0_10, %c0_11], %11 {strides = array<i32>} : memref<16x128xf32, #tpu.memory_space<vmem>>, vector<16x128xf32>,
    } else {
    }
    %c0 = arith.constant 0 : index
    %c0_1 = arith.constant 0 : index
    %3 = vector.load %arg6[%c0, %c0_1] : memref<16x128xf32, #tpu.memory_space<vmem>>, vector<16x128xf32>
    %c0_2 = arith.constant 0 : index
    %c0_3 = arith.constant 0 : index
    %4 = vector.load %arg3[%c0_2, %c0_3] : memref<16x32xf32, #tpu.memory_space<vmem>>, vector<16x32xf32>
    %c0_4 = arith.constant 0 : index
    %c0_5 = arith.constant 0 : index
    %5 = vector.load %arg4[%c0_4, %c0_5] : memref<128x32xf32, #tpu.memory_space<vmem>>, vector<128x32xf32>
    %cst = arith.constant dense<0.000000e+00> : vector<16x128xf32>
    %6 = tpu.matmul %4, %5, %cst {dimension_numbers = #tpu.dot_dimension_numbers<[1], [1], [0], [0], [0, 0, 1, 0], [], []>} : vector<16x32xf32>, vector<128x32xf32>, vector<16x128xf32> -> vector<16x128xf32>
    %7 = arith.addf %3, %6 : vector<16x128xf32>
    %c0_6 = arith.constant 0 : index
    %c0_7 = arith.constant 0 : index
    %8 = vector.load %arg6[%c0_6, %c0_7] : memref<16x128xf32, #tpu.memory_space<vmem>>, vector<16x128xf32>
    tpu.vector_store %arg6[%c0_6, %c0_7], %7 {strides = array<i32>} : memref<16x128xf32, #tpu.memory_space<vmem>>, vector<16x128xf32>,
    return
  }
  func.func @transform_0(%arg0: i32, %arg1: i32, %arg2: i32) -> (i32, i32) {
    %c0_i32 = arith.constant 0 : i32
    return %arg0, %arg2 : i32, i32
  }
  func.func @transform_1(%arg0: i32, %arg1: i32, %arg2: i32) -> (i32, i32) {
    %c0_i32 = arith.constant 0 : i32
    return %arg1, %arg2 : i32, i32
  }
  func.func @transform_2(%arg0: i32, %arg1: i32, %arg2: i32) -> (i32, i32) {
    %c0_i32 = arith.constant 0 : i32
    %c0_i32_0 = arith.constant 0 : i32
    return %c0_i32, %arg1 : i32, i32
  }
  func.func @transform_3(%arg0: i32, %arg1: i32, %arg2: i32) -> (i32, i32) {
    %c0_i32 = arith.constant 0 : i32
    return %arg0, %arg1 : i32, i32
  }
}

</mosaic_0001>

<bundles_post_ra>
// kernel: tpu_custom_call.1
= control target key start
LH: loop header
LB: loop body
LE: loop exit
PB: predicated region body
PF: predicated region fallthrough
CT: control target
= control target key end

     0   :  { %vm45_vm0 = vcmask 261120   ;;  %s326_s0 = inlined_call_operand.vmem [shape: f32[16,32], index: 0, kind: input, shape index: {}]   ;;  %s327_s1 = inlined_call_operand.vmem [shape: f32[64,32], index: 1, kind: input, shape index: {}]   ;;  %s328_s2 = inlined_call_operand.vmem [shape: f32[1,64], index: 2, kind: input, shape index: {}]   ;;  %s329_s3 = inlined_call_operand.hbm [shape: f32[16,64], index: 3, kind: output, shape index: {}]  }
   0x1   :  { %v44_v0 = vld [vmem:[%s327_s1 + $0x78] sm:$0xff]  ;;  %v43_v1 = vld [vmem:[%s327_s1 + $0x70] sm:$0xff] }
   0x2   :  { %145 = vmatpush.xpose.msk.msra.mxu0 %vm45_vm0, %v44_v0  ;;  %163 = vmatpush.xpose.msk.msra.mxu1 %vm45_vm0, %v44_v0 }
   0x3   :  { %8 = vsyncpa [#allocation3], 0  ;;  %v42_v2 = vld [vmem:[%s327_s1 + $0x68] sm:$0xff]  ;;  %v41_v3 = vld [vmem:[%s327_s1 + $0x60] sm:$0xff]  ;;  %s133_s26 = sshll.u32 %s329_s3, 4  ;;  %s211_s27 = smov 8   ;;  %s134_s26 = int_to_ptr.hbm [resolvable:$true] %s133_s26 }
   0x4   :  { %v40_v4 = vld [vmem:[%s327_s1 + $0x58] sm:$0xff]  ;;  %v39_v5 = vld [vmem:[%s327_s1 + $0x50] sm:$0xff]  ;;  %v38_v6 = vld [vmem:[%s327_s1 + $0x48] sm:$0xff] }
   0x5   :  { %v37_v7 = vld [vmem:[%s327_s1 + $0x40] sm:$0xff]  ;;  %v36_v8 = vld [vmem:[%s327_s1 + $0x38] sm:$0xff]  ;;  %v35_v9 = vld [vmem:[%s327_s1 + $0x30] sm:$0xff] }
   0x6   :  { %146 = vmatpush.xpose.msk.msra.mxu0 %vm45_vm0, %v43_v1  ;;  %164 = vmatpush.xpose.msk.msra.mxu1 %vm45_vm0, %v43_v1  ;;  %v34_v10 = vld [vmem:[%s327_s1 + $0x28] sm:$0xff]  ;;  %v33_v11 = vld [vmem:[%s327_s1 + $0x20] sm:$0xff]  ;;  %v32_v12 = vld [vmem:[%s327_s1 + $0x18] sm:$0xff] }
   0x7   :  { %v31_v13 = vld [vmem:[%s327_s1 + $0x10] sm:$0xff]  ;;  %v30_v14 = vld [vmem:[%s327_s1 + $0x8] sm:$0xff]  ;;  %v29_v15 = vld [vmem:[%s327_s1] sm:$0xff]  ;;  %s209_s1 = smov [#allocation2]  }
   0x8   :  { %v27_v16 = vld [vmem:[%s326_s0] sm:$0xff]  ;;  %v28_v17 = vld [vmem:[%s326_s0 + $0x8] sm:$0xff]  ;;  %s131_s23 = sshll.u32 %s209_s1, 4  ;;  %s210_s0 = smov 128   ;;  %s132_s23 = int_to_ptr.vmem [resolvable:$true] %s131_s23 }
   0x9   :  { %v182_v18 = vld [vmem:[%s328_s2] ss:$0 sm:$0xff] }
   0xa   :  { %147 = vmatpush.xpose.msk.msra.mxu0 %vm45_vm0, %v42_v2  ;;  %165 = vmatpush.xpose.msk.msra.mxu1 %vm45_vm0, %v42_v2 }
   0xe   :  { %148 = vmatpush.xpose.msk.msra.mxu0 %vm45_vm0, %v41_v3  ;;  %166 = vmatpush.xpose.msk.msra.mxu1 %vm45_vm0, %v41_v3 }
  0x12   :  { %149 = vmatpush.xpose.msk.msra.mxu0 %vm45_vm0, %v40_v4  ;;  %167 = vmatpush.xpose.msk.msra.mxu1 %vm45_vm0, %v40_v4 }
  0x16   :  { %150 = vmatpush.xpose.msk.msra.mxu0 %vm45_vm0, %v39_v5  ;;  %168 = vmatpush.xpose.msk.msra.mxu1 %vm45_vm0, %v39_v5 }
  0x1a   :  { %151 = vmatpush.xpose.msk.msra.mxu0 %vm45_vm0, %v38_v6  ;;  %169 = vmatpush.xpose.msk.msra.mxu1 %vm45_vm0, %v38_v6 }
  0x1e   :  { %152 = vmatpush.xpose.msk.msra.mxu0 %vm45_vm0, %v37_v7  ;;  %170 = vmatpush.xpose.msk.msra.mxu1 %vm45_vm0, %v37_v7 }
  0x22   :  { %153 = vmatpush.xpose.msk.msra.mxu0 %vm45_vm0, %v36_v8  ;;  %171 = vmatpush.xpose.msk.msra.mxu1 %vm45_vm0, %v36_v8 }
  0x26   :  { %154 = vmatpush.xpose.msk.msra.mxu0 %vm45_vm0, %v35_v9  ;;  %172 = vmatpush.xpose.msk.msra.mxu1 %vm45_vm0, %v35_v9 }
  0x2a   :  { %155 = vmatpush.xpose.msk.msra.mxu0 %vm45_vm0, %v34_v10  ;;  %173 = vmatpush.xpose.msk.msra.mxu1 %vm45_vm0, %v34_v10 }
  0x2e   :  { %156 = vmatpush.xpose.msk.msra.mxu0 %vm45_vm0, %v33_v11  ;;  %174 = vmatpush.xpose.msk.msra.mxu1 %vm45_vm0, %v33_v11 }
  0x32   :  { %157 = vmatpush.xpose.msk.msra.mxu0 %vm45_vm0, %v32_v12  ;;  %175 = vmatpush.xpose.msk.msra.mxu1 %vm45_vm0, %v32_v12 }
  0x36   :  { %158 = vmatpush.xpose.msk.msra.mxu0 %vm45_vm0, %v31_v13  ;;  %176 = vmatpush.xpose.msk.msra.mxu1 %vm45_vm0, %v31_v13 }
  0x3a   :  { %159 = vmatpush.xpose.msk.msra.mxu0 %vm45_vm0, %v30_v14  ;;  %177 = vmatpush.xpose.msk.msra.mxu1 %vm45_vm0, %v30_v14 }
  0x3e   :  { %160 = vmatpush.xpose.msk.msra.mxu0 %vm45_vm0, %v29_v15  ;;  %178 = vmatpush.xpose.msk.msra.mxu1 %vm45_vm0, %v29_v15 }
  0x41   :  { %161 = vmatmul.msk.f32.vlgmr.msra.gmra.mxu0 %vm45_vm0, %v27_v16  ;;  %162 = vmatmul.msk.f32.vlgmr.msra.gmra.mxu1 %vm45_vm0, %v28_v17 }
  0xbe   :  { %v117_v19 = vpop.f32.mrf.mxu0  ;;  %v120_v20 = vpop.f32.mrf.mxu1 }
  0xbf   :  { %v123_v21 = vadd.f32 %v182_v18, %v117_v19  ;;  %v124_v22 = vadd.f32 %v182_v18, %v120_v20 }
  0xc1   :  { %125 = vst [vmem:[#allocation2] sm:$0xff] %v123_v21 }
  0xc2   :  { %126 = vst [vmem:[#allocation2 + $0x8] sm:$0xff] %v124_v22 }
  0xc3   :  { %139 = dma.vmem_to_hbm [thread:$0]  %s132_s23, 256, %s134_s26, [#allocation3], %s210_s0, %s210_s0, %s211_s27  }
  0xc4   :  { %207 = dma.done.wait [#allocation3], 256  }
  0xc5   :  { %208 = vsyncadd [#allocation3], 4294967040 }
  0xc6   :  { %144 = vsyncpa [#allocation3], 1 }

</bundles_post_ra>
